<compile_context>
chip_gen: v7x
topology: tpu7x:2x2x1
jax: 0.10.0
libtpu: 0.0.40
codegen_flags: <defaults>
</compile_context>

<pallas_src>
from typing import NamedTuple

import jax
import jax.numpy as jnp
from jax.experimental import pallas as pl
from jax.experimental.pallas import tpu as pltpu


def _round_up(v, m):
    return ((v + m - 1) // m) * m


def _pad2d(a, rows, cols):
    pr, pc = rows - a.shape[0], cols - a.shape[1]
    if pr or pc:
        a = jnp.pad(a, ((0, pr), (0, pc)))
    return a


class MlpParams(NamedTuple):
    """Pre-padded / pre-cast parameters (built once, reused every call)."""
    w1: jax.Array          # (Din_p, Dh_p)  bf16
    b1: jax.Array          # (1, Dh_p)      f32
    w2: jax.Array          # (Dh_p, Dout_p) bf16
    b2: jax.Array          # (1, Dout_p)    f32
    in_features: int       # unpadded Din
    out_features: int      # unpadded Dout (for the final slice)


def prepare_mlp_params(w1, b1, w2, b2):
    """w1: [Din, Dh], b1: [Dh], w2: [Dh, Dout], b2: [Dout] (already transposed
    to row-major matmul layout). Pads every feature dim to a multiple of 128
    and casts weights to bf16 / biases to f32 ONCE so the per-call wrapper
    does no weight-side HBM traffic. Zero padding is exact: padded hidden
    columns see bias 0 -> GELU(0) = 0 -> contribute nothing to fc2."""
    din, dh = w1.shape
    dout = w2.shape[1]
    din_p, dh_p, dout_p = (_round_up(d, 128) for d in (din, dh, dout))
    return MlpParams(
        w1=_pad2d(w1, din_p, dh_p).astype(jnp.bfloat16),
        b1=_pad2d(b1.reshape(1, dh), 1, dh_p).astype(jnp.float32),
        w2=_pad2d(w2, dh_p, dout_p).astype(jnp.bfloat16),
        b2=_pad2d(b2.reshape(1, dout), 1, dout_p).astype(jnp.float32),
        in_features=din,
        out_features=dout,
    )


def _make_kernel(gk, approx_gelu, use_scratch_acc):
    """Specialize the kernel body on (static) gk / GELU variant / acc mode."""

    def act(v):
        # approximate=True -> tanh GELU (EUP slot, co-issues with MXU/VALU).
        # approximate=False -> exact erf (torch.nn.GELU default semantics).
        return jax.nn.gelu(v, approximate=approx_gelu)

    def fc1_fc2(x_ref, w1_ref, b1_ref, w2_ref):
        h = jnp.dot(x_ref[...], w1_ref[...], preferred_element_type=jnp.float32)
        h = act(h + b1_ref[...])
        # dropout p=0.0 -> identity (skipped)
        return jnp.dot(h.astype(w2_ref.dtype), w2_ref[...],
                       preferred_element_type=jnp.float32)

    if gk == 1:
        # Weights VMEM-resident; single shot per M tile, no accumulator.
        def kernel(x_ref, w1_ref, b1_ref, w2_ref, b2_ref, o_ref):
            p = fc1_fc2(x_ref, w1_ref, b1_ref, w2_ref)
            o_ref[...] = (p + b2_ref[...]).astype(o_ref.dtype)
        return kernel

    if not use_scratch_acc:
        # f32 output: accumulate straight into the resident output block
        # (its block index is constant across k), no scratch VMEM needed.
        def kernel(x_ref, w1_ref, b1_ref, w2_ref, b2_ref, o_ref):
            k = pl.program_id(1)
            p = fc1_fc2(x_ref, w1_ref, b1_ref, w2_ref)

            @pl.when(k == 0)
            def _():
                o_ref[...] = p + b2_ref[...]

            @pl.when(k > 0)
            def _():
                o_ref[...] += p
        return kernel

    # Low-precision output: f32 scratch accumulator; the final partial product
    # and the cast/store are fused into the last k step (no extra acc RMW).
    def kernel(x_ref, w1_ref, b1_ref, w2_ref, b2_ref, o_ref, acc_ref):
        k = pl.program_id(1)
        p = fc1_fc2(x_ref, w1_ref, b1_ref, w2_ref)

        @pl.when(k == 0)
        def _():
            acc_ref[...] = p + b2_ref[...]

        @pl.when((k > 0) & (k < gk - 1))
        def _():
            acc_ref[...] += p

        @pl.when(k == gk - 1)
        def _():
            o_ref[...] = (acc_ref[...] + p).astype(o_ref.dtype)
    return kernel


def mlp_pallas(x, params, *, tile_m=512, tile_h=512, approx_gelu=True,
               vmem_limit_bytes=None, max_resident_weight_bytes=16 << 20):
    """Fused MLP forward  y = fc2(GELU(fc1(x)))  (dropout p=0 -> identity).

    x: [B, N, Din] float array. params: MlpParams from prepare_mlp_params.
    Returns [B, N, Dout] in x.dtype.
    """
    B, N, Din = x.shape
    assert Din == params.in_features, "x feature dim must match fc1 in_features"
    Din_p, Dh_p = params.w1.shape
    Dout_p = params.w2.shape[1]
    Dout = params.out_features
    M = B * N
    out_dtype = x.dtype
    out_itemsize = jnp.dtype(out_dtype).itemsize

    # ---- M (row) tiling: large lane/sublane-dense tiles; keep gm >= 2 when
    # possible so the "parallel" axis can shard across TensorCores (v7x).
    m128 = _round_up(M, 128)
    tile_m = min(_round_up(tile_m, 128), m128)
    if tile_m >= m128 and m128 >= 256:
        tile_m = _round_up(m128 // 2, 128)

    # ---- hidden tiling: keep the full padded weights VMEM-resident (gk == 1,
    # constant index_maps -> W1/W2 DMA'd exactly once for the whole kernel)
    # whenever they fit the budget; otherwise stream Dh in tile_h chunks along
    # the trailing ("arbitrary") reduction axis.
    weight_bytes = (Din_p * Dh_p + Dh_p * Dout_p) * 2  # bf16
    if weight_bytes <= max_resident_weight_bytes:
        tile_h = Dh_p
    else:
        th = min(_round_up(tile_h, 128), Dh_p)
        while Dh_p % th:              # largest 128-multiple dividing Dh_p
            th -= 128
        tile_h = th
    gk = Dh_p // tile_h

    # Bound the fc1 intermediate (tile_m x tile_h, f32 + bf16 copy) working set.
    while tile_m > 128 and tile_m * tile_h * 6 > (24 << 20):
        tile_m = max(128, _round_up(tile_m // 2, 128))

    M_p = _round_up(M, tile_m)
    gm = M_p // tile_m

    # ---- per-call activation prep only (weights were prepared once, outside).
    x2d = x.reshape(M, Din)
    if x2d.dtype != jnp.bfloat16:
        x2d = x2d.astype(jnp.bfloat16)
    if M_p != M or Din_p != Din:
        x2d = _pad2d(x2d, M_p, Din_p)

    use_scratch_acc = (gk > 1) and (out_dtype != jnp.float32)
    kernel = _make_kernel(gk, approx_gelu, use_scratch_acc)

    # ---- explicit VMEM budgeting (v7x has only 64 MiB physical per TC).
    if vmem_limit_bytes is None:
        wbufs = 1 if gk == 1 else 2            # resident weights: single buffer
        est = (2 * tile_m * Din_p * 2                                  # x (dbl-buf)
               + wbufs * (Din_p * tile_h + tile_h * Dout_p) * 2        # W1, W2
               + 2 * tile_m * Dout_p * out_itemsize                    # out (dbl-buf)
               + (tile_m * Dout_p * 4 if use_scratch_acc else 0)       # acc scratch
               + tile_m * tile_h * 6                                   # h (f32+bf16)
               + 4 * (Dh_p + Dout_p))                                  # biases
        vmem_limit_bytes = min(max(int(est * 1.4) + (4 << 20), 32 << 20), 64 << 20)

    # Weights are re-streamed per M tile only when the hidden dim is tiled.
    weight_fetches = 1 if gk == 1 else gm
    cost = pl.CostEstimate(
        flops=2 * M_p * (Din_p * Dh_p + Dh_p * Dout_p),
        transcendentals=M_p * Dh_p,
        bytes_accessed=(x2d.size * 2
                        + weight_fetches * weight_bytes
                        + 4 * (Dh_p + Dout_p)
                        + M_p * Dout_p * out_itemsize),
    )

    scratch_shapes = ([pltpu.VMEM((tile_m, Dout_p), jnp.float32)]
                      if use_scratch_acc else [])

    out2d = pl.pallas_call(
        kernel,
        out_shape=jax.ShapeDtypeStruct((M_p, Dout_p), out_dtype),
        grid_spec=pltpu.PrefetchScalarGridSpec(
            num_scalar_prefetch=0,
            grid=(gm, gk),                                   # reduction axis last
            in_specs=[
                pl.BlockSpec((tile_m, Din_p),  lambda i, k: (i, 0)),   # x tile
                pl.BlockSpec((Din_p, tile_h),  lambda i, k: (0, k)),   # W1 tile
                pl.BlockSpec((1, tile_h),      lambda i, k: (0, k)),   # b1 tile
                pl.BlockSpec((tile_h, Dout_p), lambda i, k: (k, 0)),   # W2 tile
                pl.BlockSpec((1, Dout_p),      lambda i, k: (0, 0)),   # b2
            ],
            out_specs=pl.BlockSpec((tile_m, Dout_p), lambda i, k: (i, 0)),
            scratch_shapes=scratch_shapes,
        ),
        compiler_params=pltpu.CompilerParams(
            dimension_semantics=("parallel", "arbitrary"),
            vmem_limit_bytes=vmem_limit_bytes,
        ),
        cost_estimate=cost,
    )(x2d, params.w1, params.b1, params.w2, params.b2)

    return out2d[:M, :Dout].reshape(B, N, Dout)


def init_mlp_params(key, in_features, hidden_features, out_features,
                    dtype=jnp.float32):
    """Deterministic init mimicking nn.Linear's uniform(-1/sqrt(fan_in), ...).
    Weights are stored already transposed: [in, hidden], [hidden, out]."""
    k1, k2, k3, k4 = jax.random.split(key, 4)
    bound1 = 1.0 / (in_features ** 0.5)
    bound2 = 1.0 / (hidden_features ** 0.5)
    w1 = jax.random.uniform(k1, (in_features, hidden_features), dtype, -bound1, bound1)
    b1 = jax.random.uniform(k2, (hidden_features,), dtype, -bound1, bound1)
    w2 = jax.random.uniform(k3, (hidden_features, out_features), dtype, -bound2, bound2)
    b2 = jax.random.uniform(k4, (out_features,), dtype, -bound2, bound2)
    return w1, b1, w2, b2


def _ref(x, w1, b1, w2, b2, approx):
    xf = x.astype(jnp.float32)
    h = jax.nn.gelu(xf @ w1 + b1, approximate=approx)
    return h @ w2 + b2


if __name__ == "__main__":
    key = jax.random.PRNGKey(0)
    kx1, kp1, kx2, kp2 = jax.random.split(key, 4)

    # --- Case 1: module-sized shapes (batch=2, seq=8, in=32, hidden=64, out=32).
    # Default config: VMEM-resident weights (gk == 1), tanh-approx GELU.
    B, N, Din, Dh, Dout = 2, 8, 32, 64, 32
    x = jax.random.normal(kx1, (B, N, Din), dtype=jnp.float32)
    w1, b1, w2, b2 = init_mlp_params(kp1, Din, Dh, Dout)
    params = prepare_mlp_params(w1, b1, w2, b2)

    out = jax.block_until_ready(mlp_pallas(x, params))
    ref = _ref(x, w1, b1, w2, b2, approx=True)
    assert out.shape == (B, N, Dout)
    assert jnp.allclose(out, ref, atol=2e-2, rtol=2e-2), \
        float(jnp.max(jnp.abs(out - ref)))

    # Exact-erf GELU mode matches torch.nn.GELU()'s default semantics.
    out_exact = jax.block_until_ready(mlp_pallas(x, params, approx_gelu=False))
    ref_exact = _ref(x, w1, b1, w2, b2, approx=False)
    assert jnp.allclose(out_exact, ref_exact, atol=2e-2, rtol=2e-2), \
        float(jnp.max(jnp.abs(out_exact - ref_exact)))

    # --- Case 2: lane-dense shapes with a streamed hidden reduction (gm=2,
    # gk=2) — exercises the accumulate-into-output (f32 out) and the scratch-
    # accumulator (bf16 out) kernel variants.
    B, N, Din, Dh, Dout = 2, 128, 128, 256, 128
    x = jax.random.normal(kx2, (B, N, Din), dtype=jnp.float32)
    w1, b1, w2, b2 = init_mlp_params(kp2, Din, Dh, Dout)
    params = prepare_mlp_params(w1, b1, w2, b2)

    out = jax.block_until_ready(
        mlp_pallas(x, params, tile_m=128, tile_h=128, max_resident_weight_bytes=0))
    ref = _ref(x, w1, b1, w2, b2, approx=True)
    assert out.shape == (B, N, Dout)
    assert jnp.allclose(out, ref, atol=2e-2, rtol=2e-2), \
        float(jnp.max(jnp.abs(out - ref)))

    x_bf16 = x.astype(jnp.bfloat16)
    out_bf = jax.block_until_ready(
        mlp_pallas(x_bf16, params, tile_m=128, tile_h=128, max_resident_weight_bytes=0))
    ref_bf = _ref(x_bf16, w1, b1, w2, b2, approx=True)
    assert out_bf.dtype == jnp.bfloat16
    assert jnp.allclose(out_bf.astype(jnp.float32), ref_bf, atol=3e-2, rtol=3e-2), \
        float(jnp.max(jnp.abs(out_bf.astype(jnp.float32) - ref_bf)))

    print("KERNEL_OK")
</pallas_src>

<mosaic_0001>
module attributes {stable_mosaic.version = 11 : i64} {
  func.func @kernel(%arg0: i32, %arg1: i32, %arg2: memref<128x128xbf16, #tpu.memory_space<vmem>>, %arg3: memref<128x128xbf16, #tpu.memory_space<vmem>>, %arg4: memref<1x128xf32, #tpu.memory_space<vmem>>, %arg5: memref<128x128xbf16, #tpu.memory_space<vmem>>, %arg6: memref<1x128xf32, #tpu.memory_space<vmem>>, %arg7: memref<128x128xf32, #tpu.memory_space<vmem>>) attributes {dimension_semantics = [#tpu.dimension_semantics<parallel>, #tpu.dimension_semantics<arbitrary>], iteration_bounds = array<i64: 1, 1>, scalar_prefetch = 0 : i64, scratch_operands = 0 : i64, tpu.core_type = #tpu.core_type<tc>, window_params = [{transform_indices = @transform_0, window_bounds = array<i64: 128, 128>}, {transform_indices = @transform_1, window_bounds = array<i64: 128, 128>}, {transform_indices = @transform_2, window_bounds = array<i64: 1, 128>}, {transform_indices = @transform_3, window_bounds = array<i64: 128, 128>}, {pipeline_mode = #tpu.pipeline_mode<synchronous>, transform_indices = @transform_4, window_bounds = array<i64: 1, 128>}, {transform_indices = @transform_5, window_bounds = array<i64: 128, 128>}]} {
    %c0 = arith.constant 0 : index
    %c0_0 = arith.constant 0 : index
    %0 = vector.load %arg2[%c0, %c0_0] : memref<128x128xbf16, #tpu.memory_space<vmem>>, vector<128x128xbf16>
    %c0_1 = arith.constant 0 : index
    %c0_2 = arith.constant 0 : index
    %1 = vector.load %arg3[%c0_1, %c0_2] : memref<128x128xbf16, #tpu.memory_space<vmem>>, vector<128x128xbf16>
    %cst = arith.constant dense<0.000000e+00> : vector<128x128xf32>
    %2 = tpu.matmul %0, %1, %cst {dimension_numbers = #tpu.dot_dimension_numbers<[1], [0], [0], [1], [0, 0, 1, 1], [], []>} : vector<128x128xbf16>, vector<128x128xbf16>, vector<128x128xf32> -> vector<128x128xf32>
    %c0_3 = arith.constant 0 : index
    %c0_4 = arith.constant 0 : index
    %3 = vector.load %arg4[%c0_3, %c0_4] : memref<1x128xf32, #tpu.memory_space<vmem>>, vector<1x128xf32>
    %4 = vector.broadcast %3 : vector<1x128xf32> to vector<128x128xf32>
    %5 = arith.addf %2, %4 : vector<128x128xf32>
    %6 = arith.mulf %5, %5 : vector<128x128xf32>
    %7 = arith.mulf %5, %6 : vector<128x128xf32>
    %cst_5 = arith.constant 4.471500e-02 : f32
    %8 = vector.broadcast %cst_5 : f32 to vector<128x128xf32>
    %9 = arith.mulf %8, %7 : vector<128x128xf32>
    %10 = arith.addf %5, %9 : vector<128x128xf32>
    %cst_6 = arith.constant 0.797884583 : f32
    %11 = vector.broadcast %cst_6 : f32 to vector<128x128xf32>
    %12 = arith.mulf %11, %10 : vector<128x128xf32>
    %13 = math.tanh %12 : vector<128x128xf32>
    %cst_7 = arith.constant 1.000000e+00 : f32
    %14 = vector.broadcast %cst_7 : f32 to vector<128x128xf32>
    %15 = arith.addf %14, %13 : vector<128x128xf32>
    %cst_8 = arith.constant 5.000000e-01 : f32
    %16 = vector.broadcast %cst_8 : f32 to vector<128x128xf32>
    %17 = arith.mulf %16, %15 : vector<128x128xf32>
    %18 = arith.mulf %5, %17 : vector<128x128xf32>
    %19 = arith.truncf %18 : vector<128x128xf32> to vector<128x128xbf16>
    %c0_9 = arith.constant 0 : index
    %c0_10 = arith.constant 0 : index
    %20 = vector.load %arg5[%c0_9, %c0_10] : memref<128x128xbf16, #tpu.memory_space<vmem>>, vector<128x128xbf16>
    %cst_11 = arith.constant dense<0.000000e+00> : vector<128x128xf32>
    %21 = tpu.matmul %19, %20, %cst_11 {dimension_numbers = #tpu.dot_dimension_numbers<[1], [0], [0], [1], [0, 0, 1, 1], [], []>} : vector<128x128xbf16>, vector<128x128xbf16>, vector<128x128xf32> -> vector<128x128xf32>
    %c0_12 = arith.constant 0 : index
    %c0_13 = arith.constant 0 : index
    %22 = vector.load %arg6[%c0_12, %c0_13] : memref<1x128xf32, #tpu.memory_space<vmem>>, vector<1x128xf32>
    %23 = vector.broadcast %22 : vector<1x128xf32> to vector<128x128xf32>
    %24 = arith.addf %21, %23 : vector<128x128xf32>
    %c0_14 = arith.constant 0 : index
    %c0_15 = arith.constant 0 : index
    %25 = vector.load %arg7[%c0_14, %c0_15] : memref<128x128xf32, #tpu.memory_space<vmem>>, vector<128x128xf32>
    tpu.vector_store %arg7[%c0_14, %c0_15], %24 {strides = array<i32>} : memref<128x128xf32, #tpu.memory_space<vmem>>, vector<128x128xf32>,
    return
  }
  func.func @transform_0(%arg0: i32, %arg1: i32) -> (i32, i32) {
    %c0_i32 = arith.constant 0 : i32
    %c0_i32_0 = arith.constant 0 : i32
    return %arg0, %c0_i32 : i32, i32
  }
  func.func @transform_1(%arg0: i32, %arg1: i32) -> (i32, i32) {
    %c0_i32 = arith.constant 0 : i32
    %c0_i32_0 = arith.constant 0 : i32
    return %c0_i32, %arg1 : i32, i32
  }
  func.func @transform_2(%arg0: i32, %arg1: i32) -> (i32, i32) {
    %c0_i32 = arith.constant 0 : i32
    %c0_i32_0 = arith.constant 0 : i32
    return %c0_i32, %arg1 : i32, i32
  }
  func.func @transform_3(%arg0: i32, %arg1: i32) -> (i32, i32) {
    %c0_i32 = arith.constant 0 : i32
    %c0_i32_0 = arith.constant 0 : i32
    return %arg1, %c0_i32 : i32, i32
  }
  func.func @transform_4(%arg0: i32, %arg1: i32) -> (i32, i32) {
    %c0_i32 = arith.constant 0 : i32
    %c0_i32_0 = arith.constant 0 : i32
    %c0_i32_1 = arith.constant 0 : i32
    return %c0_i32, %c0_i32_0 : i32, i32
  }
  func.func @transform_5(%arg0: i32, %arg1: i32) -> (i32, i32) {
    %c0_i32 = arith.constant 0 : i32
    %c0_i32_0 = arith.constant 0 : i32
    return %arg0, %c0_i32 : i32, i32
  }
}

</mosaic_0001>

<bundles_post_ra>
// kernel: tpu_custom_call.1
= control target key start
LH: loop header
LB: loop body
LE: loop exit
PB: predicated region body
PF: predicated region fallthrough
CT: control target
= control target key end

     0   :  { %10 = vsyncpa [#allocation3], 0  ;;  %s1167_s0 = inlined_call_operand.hbm [shape: bf16[128,128], index: 0, kind: input, shape index: {}]   ;;  %s1168_s1 = inlined_call_operand.hbm [shape: bf16[128,128], index: 1, kind: input, shape index: {}]   ;;  %s1169_s2 = inlined_call_operand.vmem [shape: f32[1,128], index: 2, kind: input, shape index: {}]   ;;  %s1170_s3 = inlined_call_operand.hbm [shape: bf16[128,128], index: 3, kind: input, shape index: {}]   ;;  %s1171_s4 = inlined_call_operand.vmem [shape: f32[1,128], index: 4, kind: input, shape index: {}]   ;;  %s1172_s5 = inlined_call_operand.hbm [shape: f32[128,128], index: 5, kind: output, shape index: {}]  }
   0x1   :  { %11 = vsyncpa [#allocation6], 0 }
   0x2   :  { %12 = vsyncpa [#allocation4], 0  ;;  %s929_s18 = smov [#allocation5]   ;;  %s930_s20 = smov [#allocation2]  }
   0x3   :  { %s30_s19 = sshll.u32 %s929_s18, 4  ;;  %s18_s21 = sshll.u32 %s930_s20, 4  ;;  %s31_s19 = int_to_ptr.vmem [resolvable:$true] %s30_s19  ;;  %s967_s21 = int_to_ptr.vmem [resolvable:$true] %s18_s21 }
   0x4   :  { %s835_s24 = scalar_lea.hbm %s1168_s1, 1024 }
   0x5   :  { %p836_p0 = scmp.ne.s32.totalorder %s1168_s1, %s835_s24  ;;  %p839_p1 = scmp.lt.u32.totalorder %s835_s24, %s1168_s1 }
   0x7   :  { %p841_p2 = pnand %p839_p1, %p836_p0 }
   0x9   :  { %844 = shalt.err (!%p841_p2)
}
   0xa   :  { %s845_s29 = scalar_lea.vmem %s31_s19, 1024  ;;  %p850_p4 = scmp.lt.s32.totalorder %s31_s19, %s31_s19 }
   0xb   :  { %p846_p3 = scmp.ne.s32.totalorder %s31_s19, %s845_s29  ;;  %p851_p5 = scmp.lt.s32.totalorder %s845_s29, %s845_s29 }
   0xd   :  { %p852_p6 = por %p851_p5, %p850_p4 }
   0xf   :  { %p853_p7 = pnand %p852_p6, %p846_p3 }
  0x11   :  { %856 = shalt.err (!%p853_p7)
}
  0x12   :  { %s931_s30 = smov 64   ;;  %s932_s6 = smov 4  }
  0x13   :  { %36 = dma.hbm_to_vmem [thread:$0]  %s1168_s1, 1024, %s31_s19, [#allocation6], %s931_s30, %s931_s30, %s932_s6  }
  0x14   :  { %s857_s11 = scalar_lea.hbm %s1167_s0, 1024 }
  0x15   :  { %p858_p8 = scmp.ne.s32.totalorder %s1167_s0, %s857_s11  ;;  %p861_p9 = scmp.lt.u32.totalorder %s857_s11, %s1167_s0 }
  0x17   :  { %p863_p10 = pnand %p861_p9, %p858_p8 }
  0x19   :  { %866 = shalt.err (!%p863_p10)
}
  0x1a   :  { %s867_s16 = scalar_lea.vmem %s967_s21, 1024  ;;  %p872_p12 = scmp.lt.s32.totalorder %s967_s21, %s967_s21 }
  0x1b   :  { %p868_p11 = scmp.ne.s32.totalorder %s967_s21, %s867_s16  ;;  %p873_p13 = scmp.lt.s32.totalorder %s867_s16, %s867_s16 }
  0x1d   :  { %p874_p0 = por %p873_p13, %p872_p12 }
  0x1f   :  { %p875_p1 = pnand %p874_p0, %p868_p11 }
  0x21   :  { %878 = shalt.err (!%p875_p1)
}
  0x22   :  { %24 = dma.hbm_to_vmem [thread:$0]  %s1167_s0, 1024, %s967_s21, [#allocation3], %s931_s30, %s931_s30, %s932_s6  }
  0x23   :  { %s933_s18 = smov [#allocation7]   ;;  %s879_s23 = scalar_lea.hbm %s1170_s3, 1024 }
  0x24   :  { %s44_s19 = sshll.u32 %s933_s18, 4  ;;  %p880_p2 = scmp.ne.s32.totalorder %s1170_s3, %s879_s23  ;;  %s45_s19 = int_to_ptr.vmem [resolvable:$true] %s44_s19 }
  0x25   :  { %p883_p3 = scmp.lt.u32.totalorder %s879_s23, %s1170_s3 }
  0x27   :  { %p885_p4 = pnand %p883_p3, %p880_p2 }
  0x29   :  { %888 = shalt.err (!%p885_p4)
}
  0x2a   :  { %s889_s28 = scalar_lea.vmem %s45_s19, 1024  ;;  %p894_p6 = scmp.lt.s32.totalorder %s45_s19, %s45_s19 }
  0x2b   :  { %p890_p5 = scmp.ne.s32.totalorder %s45_s19, %s889_s28  ;;  %p895_p7 = scmp.lt.s32.totalorder %s889_s28, %s889_s28 }
  0x2d   :  { %p896_p8 = por %p895_p7, %p894_p6 }
  0x2f   :  { %p897_p9 = pnand %p896_p8, %p890_p5 }
  0x31   :  { %900 = shalt.err (!%p897_p9)
}
  0x32   :  { %50 = dma.hbm_to_vmem [thread:$0]  %s1170_s3, 1024, %s45_s19, [#allocation6], %s931_s30, %s931_s30, %s932_s6  }
  0x33   :  { %923 = dma.done.wait [#allocation3], 1024  }
  0x34   :  { %924 = vsyncadd [#allocation3], 4294966272 }
  0x35   :  { %925 = dma.done.wait [#allocation6], 2048  }
  0x36   :  { %926 = vsyncadd [#allocation6], 4294965248  ;;  %v779_v0 = vld [vmem:[#allocation5] sm:$0xff]   ;;  %v780_v1 = vld [vmem:[#allocation5 + $0x8] sm:$0xff]  }
  0x37   :  { %707 = vmatprep.subr.bf16.mxu0 %v779_v0  ;;  %v781_v2 = vld [vmem:[#allocation5 + $0x10] sm:$0xff]   ;;  %v782_v3 = vld [vmem:[#allocation5 + $0x18] sm:$0xff]   ;;  %v787_v4 = vld [vmem:[#allocation2] sm:$0xff]  }
  0x38   :  { %708 = vmatpush3.bf16.msra.mxu0 %v779_v0  ;;  %723 = vmatprep.mubr.bf16.mxu0 %v787_v4  ;;  %v783_v5 = vld [vmem:[#allocation5 + $0x20] sm:$0xff]   ;;  %v784_v6 = vld [vmem:[#allocation5 + $0x28] sm:$0xff]   ;;  %v785_v7 = vld [vmem:[#allocation5 + $0x30] sm:$0xff]  }
  0x39   :  { %709 = vmatprep.subr.bf16.mxu0 %v780_v1  ;;  %v786_v8 = vld [vmem:[#allocation5 + $0x38] sm:$0xff]   ;;  %v788_v9 = vld [vmem:[#allocation2 + $0x8] sm:$0xff]   ;;  %v789_v10 = vld [vmem:[#allocation2 + $0x10] sm:$0xff]  }
  0x3a   :  { %v790_v11 = vld [vmem:[#allocation2 + $0x18] sm:$0xff]   ;;  %v791_v12 = vld [vmem:[#allocation2 + $0x20] sm:$0xff]   ;;  %v792_v13 = vld [vmem:[#allocation2 + $0x28] sm:$0xff]  }
  0x3b   :  { %v793_v14 = vld [vmem:[#allocation2 + $0x30] sm:$0xff]   ;;  %v794_v15 = vld [vmem:[#allocation2 + $0x38] sm:$0xff]   ;;  %v795_v16 = vld [vmem:[#allocation7] sm:$0xff]  }
  0x3c   :  { %710 = vmatpush3.bf16.msra.mxu0 %v780_v1  ;;  %739 = vmatprep.subr.bf16.mxu1 %v795_v16  ;;  %v796_v17 = vld [vmem:[#allocation7 + $0x8] sm:$0xff]   ;;  %v797_v18 = vld [vmem:[#allocation7 + $0x10] sm:$0xff]   ;;  %v798_v19 = vld [vmem:[#allocation7 + $0x18] sm:$0xff]  }
  0x3d   :  { %711 = vmatprep.subr.bf16.mxu0 %v781_v2  ;;  %740 = vmatpush3.bf16.msra.mxu1 %v795_v16  ;;  %v799_v20 = vld [vmem:[#allocation7 + $0x20] sm:$0xff]   ;;  %v800_v21 = vld [vmem:[#allocation7 + $0x28] sm:$0xff]   ;;  %v801_v22 = vld [vmem:[#allocation7 + $0x30] sm:$0xff]  }
  0x3e   :  { %741 = vmatprep.subr.bf16.mxu1 %v796_v17  ;;  %v802_v23 = vld [vmem:[#allocation7 + $0x38] sm:$0xff]   ;;  %v1022_v24 = vld [vmem:[%s1169_s2] ss:$0 sm:$0xff] }
  0x40   :  { %712 = vmatpush3.bf16.msra.mxu0 %v781_v2 }
  0x41   :  { %713 = vmatprep.subr.bf16.mxu0 %v782_v3  ;;  %742 = vmatpush3.bf16.msra.mxu1 %v796_v17 }
  0x42   :  { %743 = vmatprep.subr.bf16.mxu1 %v797_v18 }
  0x44   :  { %714 = vmatpush3.bf16.msra.mxu0 %v782_v3 }
  0x45   :  { %715 = vmatprep.subr.bf16.mxu0 %v783_v5  ;;  %744 = vmatpush3.bf16.msra.mxu1 %v797_v18 }
  0x46   :  { %745 = vmatprep.subr.bf16.mxu1 %v798_v19 }
  0x48   :  { %716 = vmatpush3.bf16.msra.mxu0 %v783_v5 }
  0x49   :  { %717 = vmatprep.subr.bf16.mxu0 %v784_v6  ;;  %746 = vmatpush3.bf16.msra.mxu1 %v798_v19 }
  0x4a   :  { %747 = vmatprep.subr.bf16.mxu1 %v799_v20 }
  0x4c   :  { %718 = vmatpush3.bf16.msra.mxu0 %v784_v6 }
  0x4d   :  { %719 = vmatprep.subr.bf16.mxu0 %v785_v7  ;;  %748 = vmatpush3.bf16.msra.mxu1 %v799_v20 }
  0x4e   :  { %749 = vmatprep.subr.bf16.mxu1 %v800_v21 }
  0x50   :  { %720 = vmatpush3.bf16.msra.mxu0 %v785_v7 }
  0x51   :  { %721 = vmatprep.subr.bf16.mxu0 %v786_v8  ;;  %750 = vmatpush3.bf16.msra.mxu1 %v800_v21 }
  0x52   :  { %751 = vmatprep.subr.bf16.mxu1 %v801_v22 }
  0x54   :  { %722 = vmatpush3.bf16.msra.mxu0 %v786_v8 }
  0x55   :  { %752 = vmatpush3.bf16.msra.mxu1 %v801_v22 }
  0x56   :  { %753 = vmatprep.subr.bf16.mxu1 %v802_v23 }
  0x57   :  { %724 = vmatmul.mubr.bf16.vlgmr.msra.gmra.mrb[0].mxu0 %v788_v9 }
  0x58   :  { %727 = vmatprep.mubr.bf16.mxu0 %v789_v10 }
  0x59   :  { %754 = vmatpush3.bf16.msra.mxu1 %v802_v23 }
  0x5f   :  { %728 = vmatmul.mubr.bf16.gmra.mrb[4].mxu0 %v790_v11 }
  0x60   :  { %731 = vmatprep.mubr.bf16.mxu0 %v791_v12 }
  0x67   :  { %732 = vmatmul.mubr.bf16.gmra.mrb[8].mxu0 %v792_v13 }
  0x68   :  { %735 = vmatprep.mubr.bf16.mxu0 %v793_v14 }
  0x6f   :  { %736 = vmatmul.mubr.bf16.gmra.mrb[12].mxu0 %v794_v15 }
 0x12a   :  { %v725_v25 = vpop.f32.mrb[0].mxu0 }
 0x12b   :  { %v1025_v26 = vadd.f32 %v725_v25, %v1022_v24  ;;  %v232_v27 = vpop.f32.mrb[1].mxu0 }
 0x12c   :  { %v1028_v28 = vadd.f32 %v1022_v24, %v232_v27  ;;  %v726_v29 = vpop.f32.mrb[2].mxu0 }
 0x12d   :  { %v297_v30 = vmul.f32 %v1025_v26, %v1025_v26  ;;  %v1033_v31 = vadd.f32 %v726_v29, %v1022_v24  ;;  %v235_v32 = vpop.f32.mrb[3].mxu0 }
 0x12e   :  { %v295_v33 = vmul.f32 %v1028_v28, %v1028_v28  ;;  %v1038_v34 = vadd.f32 %v1022_v24, %v235_v32 }
 0x12f   :  { %v313_v35 = vmul.f32 %v297_v30, %v1025_v26  ;;  %v298_v36 = vmul.f32 %v1033_v31, %v1033_v31 }
 0x130   :  { %v311_v37 = vmul.f32 %v295_v33, %v1028_v28  ;;  %v296_v38 = vmul.f32 %v1038_v34, %v1038_v34 }
 0x131   :  { %v329_v39 = vmul.f32 0.044715, %v313_v35  ;;  %v314_v40 = vmul.f32 %v298_v36, %v1033_v31 }
 0x132   :  { %v327_v41 = vmul.f32 0.044715, %v311_v37  ;;  %v312_v42 = vmul.f32 %v296_v38, %v1038_v34  ;;  %v729_v43 = vpop.f32.mrb[4].mxu0 }
 0x133   :  { %v345_v44 = vadd.f32 %v329_v39, %v1025_v26  ;;  %v330_v45 = vmul.f32 0.044715, %v314_v40  ;;  %v1050_v46 = vadd.f32 %v729_v43, %v1022_v24  ;;  %v248_v47 = vpop.f32.mrb[5].mxu0 }
 0x134   :  { %v328_v48 = vmul.f32 0.044715, %v312_v42  ;;  %v1053_v49 = vadd.f32 %v1022_v24, %v248_v47  ;;  %v730_v50 = vpop.f32.mrb[6].mxu0  ;;  %v343_v51 = vadd.f32 %v327_v41, %v1028_v28 }
 0x135   :  { %v361_v52 = vmul.f32 0.7978846, %v345_v44  ;;  %v346_v53 = vadd.f32 %v330_v45, %v1033_v31  ;;  %v301_v54 = vmul.f32 %v1050_v46, %v1050_v46  ;;  %v1060_v55 = vadd.f32 %v730_v50, %v1022_v24  ;;  %v251_v56 = vpop.f32.mrb[7].mxu0 }
 0x136   :  { %v299_v57 = vmul.f32 %v1053_v49, %v1053_v49  ;;  %v1065_v58 = vadd.f32 %v1022_v24, %v251_v56  ;;  %v344_v59 = vadd.f32 %v328_v48, %v1038_v34  ;;  %v359_v60 = vmul.f32 0.7978846, %v343_v51 }
 0x137   :  { %803 = vtanh.f32 %v361_v52  ;;  %v362_v61 = vmul.f32 0.7978846, %v346_v53  ;;  %v317_v62 = vmul.f32 %v301_v54, %v1050_v46  ;;  %v302_v63 = vmul.f32 %v1060_v55, %v1060_v55 }
 0x138   :  { %v315_v0 = vmul.f32 %v299_v57, %v1053_v49  ;;  %v300_v1 = vmul.f32 %v1065_v58, %v1065_v58  ;;  %v360_v2 = vmul.f32 0.7978846, %v344_v59  ;;  %805 = vtanh.f32 %v359_v60 }
 0x139   :  { %807 = vtanh.f32 %v362_v61  ;;  %v333_v3 = vmul.f32 0.044715, %v317_v62  ;;  %v318_v4 = vmul.f32 %v302_v63, %v1060_v55 }
 0x13a   :  { %v331_v5 = vmul.f32 0.044715, %v315_v0  ;;  %v316_v6 = vmul.f32 %v300_v1, %v1065_v58  ;;  %v733_v7 = vpop.f32.mrb[8].mxu0  ;;  %809 = vtanh.f32 %v360_v2 }
 0x13b   :  { %v349_v8 = vadd.f32 %v333_v3, %v1050_v46  ;;  %v334_v9 = vmul.f32 0.044715, %v318_v4  ;;  %v1078_v10 = vadd.f32 %v733_v7, %v1022_v24  ;;  %v264_v11 = vpop.f32.mrb[9].mxu0 }
 0x13c   :  { %v347_v12 = vadd.f32 %v331_v5, %v1053_v49  ;;  %v332_v13 = vmul.f32 0.044715, %v316_v6  ;;  %v1082_v14 = vadd.f32 %v1022_v24, %v264_v11  ;;  %v734_v15 = vpop.f32.mrb[10].mxu0 }
 0x13d   :  { %v365_v16 = vmul.f32 0.7978846, %v349_v8  ;;  %v350_v17 = vadd.f32 %v334_v9, %v1060_v55  ;;  %v305_v18 = vmul.f32 %v1078_v10, %v1078_v10  ;;  %v1088_v19 = vadd.f32 %v734_v15, %v1022_v24  ;;  %v267_v20 = vpop.f32.mrb[11].mxu0 }
 0x13e   :  { %v363_v21 = vmul.f32 0.7978846, %v347_v12  ;;  %v348_v22 = vadd.f32 %v332_v13, %v1065_v58  ;;  %v303_v23 = vmul.f32 %v1082_v14, %v1082_v14  ;;  %v1094_v25 = vadd.f32 %v1022_v24, %v267_v20 }
 0x13f   :  { %811 = vtanh.f32 %v365_v16  ;;  %v366_v27 = vmul.f32 0.7978846, %v350_v17  ;;  %v321_v29 = vmul.f32 %v305_v18, %v1078_v10  ;;  %v306_v30 = vmul.f32 %v1088_v19, %v1088_v19 }
 0x140   :  { %813 = vtanh.f32 %v363_v21  ;;  %v364_v32 = vmul.f32 0.7978846, %v348_v22  ;;  %v319_v33 = vmul.f32 %v303_v23, %v1082_v14  ;;  %v304_v35 = vmul.f32 %v1094_v25, %v1094_v25 }
 0x141   :  { %v804_v36 = vpop.eup %803  ;;  %815 = vtanh.f32 %v366_v27  ;;  %v337_v37 = vmul.f32 0.044715, %v321_v29  ;;  %v322_v38 = vmul.f32 %v306_v30, %v1088_v19 }
 0x142   :  { %v806_v39 = vpop.eup %805  ;;  %817 = vtanh.f32 %v364_v32  ;;  %v335_v40 = vmul.f32 0.044715, %v319_v33  ;;  %v320_v41 = vmul.f32 %v304_v35, %v1094_v25  ;;  %v737_v42 = vpop.f32.mrb[12].mxu0  ;;  %v393_v43 = vadd.f32 1.0, %v804_v36 }
 0x143   :  { %v808_v44 = vpop.eup %807  ;;  %v353_v45 = vadd.f32 %v337_v37, %v1078_v10  ;;  %v338_v47 = vmul.f32 0.044715, %v322_v38  ;;  %v1106_v48 = vadd.f32 %v737_v42, %v1022_v24  ;;  %v280_v50 = vpop.f32.mrb[13].mxu0  ;;  %v391_v51 = vadd.f32 1.0, %v806_v39 }
 0x144   :  { %v351_v52 = vadd.f32 %v335_v40, %v1082_v14  ;;  %v336_v53 = vmul.f32 0.044715, %v320_v41  ;;  %v1110_v54 = vadd.f32 %v1022_v24, %v280_v50  ;;  %v738_v56 = vpop.f32.mrb[14].mxu0  ;;  %v394_v57 = vadd.f32 1.0, %v808_v44  ;;  %v810_v0 = vpop.eup %809 }
 0x145   :  { %v369_v59 = vmul.f32 0.7978846, %v353_v45  ;;  %v354_v60 = vadd.f32 %v338_v47, %v1088_v19  ;;  %v309_v61 = vmul.f32 %v1106_v48, %v1106_v48  ;;  %v1116_v62 = vadd.f32 %v738_v56, %v1022_v24  ;;  %v283_v63 = vpop.f32.mrb[15].mxu0 }
 0x146   :  { %v367_v1 = vmul.f32 0.7978846, %v351_v52  ;;  %v352_v2 = vadd.f32 %v336_v53, %v1094_v25  ;;  %v307_v3 = vmul.f32 %v1110_v54, %v1110_v54  ;;  %v1122_v4 = vadd.f32 %v1022_v24, %v283_v63 }
 0x147   :  { %819 = vtanh.f32 %v369_v59  ;;  %v370_v5 = vmul.f32 0.7978846, %v354_v60  ;;  %v325_v6 = vmul.f32 %v309_v61, %v1106_v48  ;;  %v310_v7 = vmul.f32 %v1116_v62, %v1116_v62 }
 0x148   :  { %821 = vtanh.f32 %v367_v1  ;;  %v368_v8 = vmul.f32 0.7978846, %v352_v2  ;;  %v323_v9 = vmul.f32 %v307_v3, %v1110_v54  ;;  %v308_v11 = vmul.f32 %v1122_v4, %v1122_v4 }
 0x149   :  { %v812_v12 = vpop.eup %811  ;;  %823 = vtanh.f32 %v370_v5  ;;  %v341_v13 = vmul.f32 0.044715, %v325_v6  ;;  %v326_v24 = vmul.f32 %v310_v7, %v1116_v62  ;;  %v392_v15 = vadd.f32 1.0, %v810_v0 }
 0x14a   :  { %v814_v16 = vpop.eup %813  ;;  %825 = vtanh.f32 %v368_v8  ;;  %v339_v17 = vmul.f32 0.044715, %v323_v9  ;;  %v324_v18 = vmul.f32 %v308_v11, %v1122_v4  ;;  %v407_v20 = vmul.f32 0.5, %v391_v51 }
 0x14b   :  { %v816_v21 = vpop.eup %815  ;;  %v357_v22 = vadd.f32 %v341_v13, %v1106_v48  ;;  %v342_v23 = vmul.f32 0.044715, %v326_v24  ;;  %v408_v27 = vmul.f32 0.5, %v392_v15  ;;  %v409_v29 = vmul.f32 0.5, %v393_v43 }
 0x14c   :  { %v818_v30 = vpop.eup %817  ;;  %v355_v32 = vadd.f32 %v339_v17, %v1110_v54  ;;  %v340_v33 = vmul.f32 0.044715, %v324_v18  ;;  %v423_v35 = vmul.f32 %v407_v20, %v1028_v28  ;;  %v410_v36 = vmul.f32 0.5, %v394_v57 }
 0x14d   :  { %v373_v37 = vmul.f32 0.7978846, %v357_v22  ;;  %v358_v38 = vadd.f32 %v342_v23, %v1116_v62  ;;  %v424_v39 = vmul.f32 %v408_v27, %v1038_v34  ;;  %v425_v40 = vmul.f32 %v409_v29, %v1025_v26 }
 0x14e   :  { %v371_v41 = vmul.f32 0.7978846, %v355_v32  ;;  %v356_v42 = vadd.f32 %v340_v33, %v1122_v4  ;;  %v426_v44 = vmul.f32 %v410_v36, %v1033_v31  ;;  %v395_v43 = vadd.f32 1.0, %v814_v16 }
 0x14f   :  { %827 = vtanh.f32 %v373_v37  ;;  %v374_v45 = vmul.f32 0.7978846, %v358_v38  ;;  %v439_v47 = vpack.c.bf16 %v424_v39, %v423_v35  ;;  %v396_v50 = vadd.f32 1.0, %v818_v30  ;;  %v666_v38 = vld [vmem:[%s1171_s4] ss:$0 sm:$0xff]  ;;  %s934_s4 = smov [#allocation8]  }
 0x150   :  { %829 = vtanh.f32 %v371_v41  ;;  %v372_v28 = vmul.f32 0.7978846, %v356_v42  ;;  %v440_v51 = vpack.c.bf16 %v426_v44, %v425_v40  ;;  %v411_v52 = vmul.f32 0.5, %v395_v43  ;;  %s636_s6 = sshll.u32 %s934_s4, 4  ;;  %s637_s6 = int_to_ptr.vmem [resolvable:$true] %s636_s6 }
 0x151   :  { %v820_v53 = vpop.eup %819  ;;  %831 = vtanh.f32 %v374_v45  ;;  %755 = vmatprep.mubr.bf16.mxu1 %v439_v47  ;;  %v412_v34 = vmul.f32 0.5, %v396_v50  ;;  %v397_v56 = vadd.f32 1.0, %v812_v12  ;;  %v398_v26 = vadd.f32 1.0, %v816_v21  ;;  %s901_s7 = scalar_lea.vmem %s637_s6, 2048  ;;  %p906_p11 = scmp.lt.s32.totalorder %s637_s6, %s637_s6 }
 0x152   :  { %v822_v57 = vpop.eup %821  ;;  %833 = vtanh.f32 %v372_v28  ;;  %756 = vmatmul.mubr.bf16.vlgmr.msra.gmra.mrb[0].mxu1 %v440_v51  ;;  %v427_v31 = vmul.f32 %v411_v52, %v1053_v49  ;;  %v401_v59 = vadd.f32 1.0, %v820_v53  ;;  %p902_p10 = scmp.ne.s32.totalorder %s637_s6, %s901_s7  ;;  %p907_p12 = scmp.lt.s32.totalorder %s901_s7, %s901_s7 }
 0x153   :  { %v824_v60 = vpop.eup %823  ;;  %v428_v61 = vmul.f32 %v412_v34, %v1065_v58  ;;  %v413_v63 = vmul.f32 0.5, %v397_v56  ;;  %v414_v0 = vmul.f32 0.5, %v398_v26  ;;  %v399_v1 = vadd.f32 1.0, %v822_v57 }
 0x154   :  { %v826_v2 = vpop.eup %825  ;;  %v402_v3 = vadd.f32 1.0, %v824_v60  ;;  %v417_v5 = vmul.f32 0.5, %v401_v59  ;;  %p908_p13 = por %p907_p12, %p906_p11 }
 0x155   :  { %v441_v6 = vpack.c.bf16 %v428_v61, %v427_v31  ;;  %v429_v7 = vmul.f32 %v413_v63, %v1050_v46  ;;  %v430_v8 = vmul.f32 %v414_v0, %v1060_v55  ;;  %v400_v9 = vadd.f32 1.0, %v826_v2 }
 0x156   :  { %v415_v11 = vmul.f32 0.5, %v399_v1  ;;  %v418_v12 = vmul.f32 0.5, %v402_v3  ;;  %v433_v24 = vmul.f32 %v417_v5, %v1078_v10  ;;  %p909_p0 = pnand %p908_p13, %p902_p10 }
 0x157   :  { %759 = vmatprep.mubr.bf16.mxu1 %v441_v6  ;;  %v442_v49 = vpack.c.bf16 %v430_v8, %v429_v7  ;;  %v416_v13 = vmul.f32 0.5, %v400_v9 }
 0x158   :  { %v434_v58 = vmul.f32 %v418_v12, %v1088_v19  ;;  %v431_v16 = vmul.f32 %v415_v11, %v1082_v14 }
 0x159   :  { %v828_v15 = vpop.eup %827  ;;  %v432_v17 = vmul.f32 %v416_v13, %v1094_v25 }
 0x15a   :  { %v830_v18 = vpop.eup %829  ;;  %760 = vmatmul.mubr.bf16.gmra.mrb[4].mxu1 %v442_v49  ;;  %v444_v46 = vpack.c.bf16 %v434_v58, %v433_v24  ;;  %v405_v20 = vadd.f32 1.0, %v828_v15 }
 0x15b   :  { %v832_v55 = vpop.eup %831  ;;  %v443_v21 = vpack.c.bf16 %v432_v17, %v431_v16  ;;  %v403_v22 = vadd.f32 1.0, %v830_v18 }
 0x15c   :  { %v834_v23 = vpop.eup %833  ;;  %v406_v27 = vadd.f32 1.0, %v832_v55  ;;  %v421_v29 = vmul.f32 0.5, %v405_v20 }
 0x15d   :  { %763 = vmatprep.mubr.bf16.mxu1 %v443_v21  ;;  %v404_v30 = vadd.f32 1.0, %v834_v23  ;;  %v419_v10 = vmul.f32 0.5, %v403_v22 }
 0x15e   :  { %v422_v32 = vmul.f32 0.5, %v406_v27  ;;  %v437_v33 = vmul.f32 %v421_v29, %v1106_v48 }
 0x15f   :  { %v420_v19 = vmul.f32 0.5, %v404_v30  ;;  %v435_v25 = vmul.f32 %v419_v10, %v1110_v54 }
 0x160   :  { %v438_v14 = vmul.f32 %v422_v32, %v1116_v62 }
 0x161   :  { %v436_v35 = vmul.f32 %v420_v19, %v1122_v4 }
 0x162   :  { %764 = vmatmul.mubr.bf16.gmra.mrb[8].mxu1 %v444_v46  ;;  %v446_v36 = vpack.c.bf16 %v438_v14, %v437_v33 }
 0x163   :  { %v445_v37 = vpack.c.bf16 %v436_v35, %v435_v25 }
 0x165   :  { %767 = vmatprep.mubr.bf16.mxu1 %v445_v37 }
 0x16a   :  { %768 = vmatmul.mubr.bf16.gmra.mrb[12].mxu1 %v446_v36 }
 0x225   :  { %v757_v39 = vpop.f32.mrb[0].mxu1 }
 0x226   :  { %v561_v40 = vadd.f32 %v757_v39, %v666_v38  ;;  %v552_v41 = vpop.f32.mrb[1].mxu1 }
 0x227   :  { %v553_v42 = vadd.f32 %v666_v38, %v552_v41  ;;  %v758_v48 = vpop.f32.mrb[2].mxu1 }
 0x228   :  { %617 = vst [vmem:[#allocation8 + $0x10] sm:$0xff] %v561_v40  ;;  %v564_v62 = vadd.f32 %v758_v48, %v666_v38  ;;  %v555_v44 = vpop.f32.mrb[3].mxu1 }
 0x229   :  { %615 = vst [vmem:[#allocation8] sm:$0xff] %v553_v42  ;;  %v556_v54 = vadd.f32 %v666_v38, %v555_v44 }
 0x22a   :  { %618 = vst [vmem:[#allocation8 + $0x18] sm:$0xff] %v564_v62 }
 0x22b   :  { %616 = vst [vmem:[#allocation8 + $0x8] sm:$0xff] %v556_v54 }
 0x22d   :  { %v761_v4 = vpop.f32.mrb[4].mxu1 }
 0x22e   :  { %v577_v43 = vadd.f32 %v761_v4, %v666_v38  ;;  %v568_v45 = vpop.f32.mrb[5].mxu1 }
 0x22f   :  { %v569_v47 = vadd.f32 %v666_v38, %v568_v45  ;;  %v762_v50 = vpop.f32.mrb[6].mxu1 }
 0x230   :  { %621 = vst [vmem:[#allocation8 + $0x30] sm:$0xff] %v577_v43  ;;  %v580_v28 = vadd.f32 %v762_v50, %v666_v38  ;;  %v571_v51 = vpop.f32.mrb[7].mxu1 }
 0x231   :  { %619 = vst [vmem:[#allocation8 + $0x20] sm:$0xff] %v569_v47  ;;  %v572_v52 = vadd.f32 %v666_v38, %v571_v51 }
 0x232   :  { %622 = vst [vmem:[#allocation8 + $0x38] sm:$0xff] %v580_v28 }
 0x233   :  { %620 = vst [vmem:[#allocation8 + $0x28] sm:$0xff] %v572_v52 }
 0x235   :  { %v765_v53 = vpop.f32.mrb[8].mxu1 }
 0x236   :  { %v593_v34 = vadd.f32 %v765_v53, %v666_v38  ;;  %v584_v56 = vpop.f32.mrb[9].mxu1 }
 0x237   :  { %v585_v26 = vadd.f32 %v666_v38, %v584_v56  ;;  %v766_v57 = vpop.f32.mrb[10].mxu1 }
 0x238   :  { %625 = vst [vmem:[#allocation8 + $0x50] sm:$0xff] %v593_v34  ;;  %v596_v31 = vadd.f32 %v766_v57, %v666_v38  ;;  %v587_v59 = vpop.f32.mrb[11].mxu1 }
 0x239   :  { %623 = vst [vmem:[#allocation8 + $0x40] sm:$0xff] %v585_v26  ;;  %v588_v60 = vadd.f32 %v666_v38, %v587_v59 }
 0x23a   :  { %626 = vst [vmem:[#allocation8 + $0x58] sm:$0xff] %v596_v31 }
 0x23b   :  { %624 = vst [vmem:[#allocation8 + $0x48] sm:$0xff] %v588_v60 }
 0x23d   :  { %v769_v61 = vpop.f32.mrb[12].mxu1 }
 0x23e   :  { %v609_v63 = vadd.f32 %v769_v61, %v666_v38  ;;  %v600_v0 = vpop.f32.mrb[13].mxu1 }
 0x23f   :  { %v601_v1 = vadd.f32 %v666_v38, %v600_v0  ;;  %v770_v2 = vpop.f32.mrb[14].mxu1 }
 0x240   :  { %629 = vst [vmem:[#allocation8 + $0x70] sm:$0xff] %v609_v63  ;;  %v612_v3 = vadd.f32 %v770_v2, %v666_v38  ;;  %v603_v5 = vpop.f32.mrb[15].mxu1 }
 0x241   :  { %627 = vst [vmem:[#allocation8 + $0x60] sm:$0xff] %v601_v1  ;;  %v604_v6 = vadd.f32 %v666_v38, %v603_v5 }
 0x242   :  { %630 = vst [vmem:[#allocation8 + $0x78] sm:$0xff] %v612_v3 }
 0x243   :  { %628 = vst [vmem:[#allocation8 + $0x68] sm:$0xff] %v604_v6 }
 0x244   :  { %912 = shalt.err (!%p909_p0)
}
 0x245   :  { %s913_s10 = scalar_lea.hbm %s1172_s5, 2048 }
 0x246   :  { %p914_p1 = scmp.ne.s32.totalorder %s1172_s5, %s913_s10  ;;  %p917_p2 = scmp.lt.u32.totalorder %s913_s10, %s1172_s5 }
 0x248   :  { %p919_p3 = pnand %p917_p2, %p914_p1 }
 0x24a   :  { %922 = shalt.err (!%p919_p3)
}
 0x24b   :  { %s935_s15 = smov 128   ;;  %s936_s16 = smov 8  }
 0x24c   :  { %642 = dma.vmem_to_hbm [thread:$0]  %s637_s6, 2048, %s1172_s5, [#allocation4], %s935_s15, %s935_s15, %s936_s16  }
 0x24d   :  { %927 = dma.done.wait [#allocation4], 2048  }
 0x24e   :  { %928 = vsyncadd [#allocation4], 4294965248 }
 0x24f   :  { %646 = vsyncpa [#allocation3], 1 }
 0x250   :  { %647 = vsyncpa [#allocation6], 1 }
 0x251   :  { %648 = vsyncpa [#allocation4], 1 }

</bundles_post_ra>
